<compile_context>
chip_gen: v6e
topology: v6e:2x2x1
jax: 0.10.0
libtpu: 0.0.40
codegen_flags: <defaults>
</compile_context>

<pallas_src>
import jax
import jax.numpy as jnp
from jax.experimental import pallas as pl
from jax.experimental.pallas import tpu as pltpu


def _make_cat_bn_act_kernel(ch_offsets):
    """Kernel for len(ch_offsets)-1 inputs; concat fused via static channel slices."""
    n_in = len(ch_offsets) - 1

    def kernel(*refs):
        x_refs = refs[:n_in]
        sb_ref = refs[n_in]          # (C, 2): col 0 = scale, col 1 = bias (resident)
        o_ref = refs[n_in + 1]       # (C, hw_blk)
        for k in range(n_in):
            lo, hi = ch_offsets[k], ch_offsets[k + 1]
            # Note: unaligned (non multiple-of-8) channel offsets lower to
            # masked sublane stores; harmless while HBM-bound.
            scale = sb_ref[lo:hi, 0:1]          # (Ck, 1)
            bias = sb_ref[lo:hi, 1:2]           # (Ck, 1)
            y = x_refs[k][...] * scale + bias   # (Ck, hw_blk) per-channel affine
            o_ref[lo:hi, :] = jnp.maximum(y, 0.0).astype(o_ref.dtype)

    return kernel


def _vmem_capacity_bytes():
    """Physical per-TensorCore VMEM; conservative 64 MiB fallback (v7x)."""
    try:
        return int(pltpu.get_tpu_info().vmem_capacity_bytes)
    except Exception:
        return 64 * 1024 * 1024


def _pick_hw_block(hw, c_total, itemsize, target_bytes, min_hw_steps):
    """Pick the lane (H*W) block size.

    Prefers lane-dense multiples of 128 (the last block may be ragged; Pallas
    masks out-of-bounds output stores, and OOB input reads are elementwise
    garbage that never reaches a valid output lane).  Small extents are taken
    whole (block == full dim is always legal).
    """
    per_lane_bytes = max(1, c_total * itemsize)
    cap = max(128, min(target_bytes // per_lane_bytes,
                       pl.cdiv(hw, max(1, min_hw_steps))))
    if hw <= cap:
        return hw                                # single whole-extent block
    blk = max(128, (cap // 128) * 128)
    # Rebalance so the ragged last block isn't tiny (never exceeds `cap`).
    n_blk = pl.cdiv(hw, blk)
    blk = pl.cdiv(pl.cdiv(hw, n_blk), 128) * 128
    return blk


def cat_bn_act(xs, gamma, beta, running_mean, running_var, eps=1e-3):
    """torch.cat(xs, dim=1) -> BatchNorm2d (inference, eps) -> ReLU, NCHW in/out."""
    if not isinstance(xs, (tuple, list)):
        xs = (xs,)
    xs = tuple(xs)
    N, _, H, W = xs[0].shape
    for x in xs:
        assert x.shape[0] == N and x.shape[2] == H and x.shape[3] == W
        assert x.dtype == xs[0].dtype
    ch = [int(x.shape[1]) for x in xs]
    offs = [0]
    for c in ch:
        offs.append(offs[-1] + c)
    C = offs[-1]
    HW = H * W
    out_dtype = xs[0].dtype
    itemsize = xs[0].dtype.itemsize

    # ---- Fold BN (running stats) into per-channel scale & bias (f32 math). ----
    scale = gamma.astype(jnp.float32) / jnp.sqrt(
        running_var.astype(jnp.float32) + jnp.float32(eps))
    bias = beta.astype(jnp.float32) - running_mean.astype(jnp.float32) * scale
    # bf16 activations (v6e/v7x): carry params in bf16 for packed-VPU math;
    # f32 activations keep exact f32 params.
    param_dtype = jnp.bfloat16 if out_dtype == jnp.bfloat16 else jnp.float32
    sb = jnp.stack([scale, bias], axis=-1).astype(param_dtype)   # (C, 2), one DMA

    # ---- NCHW-native slabs: (N, Ck, H*W); free contiguous reshapes. ----
    xs3 = [x.reshape(N, ck, HW) for x, ck in zip(xs, ch)]

    # ---- Generation-aware VMEM budgeting & block sizing. ----
    phys_vmem = _vmem_capacity_bytes()
    vmem_cap = (phys_vmem * 3) // 4                    # <= ~48 MiB on v7x
    margin = 8 * 1024 * 1024                           # Mosaic internal scratch
    c_pad = pl.cdiv(C, 8) * 8
    sb_vmem = 2 * c_pad * 128 * jnp.dtype(param_dtype).itemsize  # lane-padded, 2 bufs

    base_target = (8 << 20) if phys_vmem >= (96 << 20) else (4 << 20)
    avail = max(1 << 20, vmem_cap - margin - sb_vmem)
    target_bytes = max(128 * 1024, min(base_target, avail // 4))

    # Ensure >=2 grid steps on batch-1 shapes (2 TCs on v7x need shardable work).
    min_hw_steps = 1 if N >= 2 else 2
    hw_blk = _pick_hw_block(HW, C, itemsize, target_bytes, min_hw_steps)
    n_hw = pl.cdiv(HW, hw_blk)
    grid = (N, n_hw)

    block_bytes = C * hw_blk * itemsize                # one input slab == one output slab
    vmem_limit = int(min(vmem_cap,
                         max(4 * block_bytes + sb_vmem + margin, 16 << 20)))

    in_specs = [
        pl.BlockSpec((None, ck, hw_blk), lambda n, s: (n, 0, s)) for ck in ch
    ] + [
        pl.BlockSpec((C, 2), lambda n, s: (0, 0)),     # packed scale|bias, resident
    ]
    out_spec = pl.BlockSpec((None, C, hw_blk), lambda n, s: (n, 0, s))

    cost = pl.CostEstimate(
        flops=3 * N * C * HW,
        transcendentals=0,
        bytes_accessed=2 * N * C * HW * itemsize
        + 2 * C * jnp.dtype(param_dtype).itemsize,
    )

    out3 = pl.pallas_call(
        _make_cat_bn_act_kernel(offs),
        out_shape=jax.ShapeDtypeStruct((N, C, HW), out_dtype),
        grid_spec=pltpu.PrefetchScalarGridSpec(
            num_scalar_prefetch=0,
            grid=grid,
            in_specs=in_specs,
            out_specs=out_spec,
        ),
        compiler_params=pltpu.CompilerParams(
            dimension_semantics=("parallel", "parallel"),
            vmem_limit_bytes=vmem_limit),
        cost_estimate=cost,
    )(*xs3, sb)

    return out3.reshape(N, C, H, W)                    # free reshape back to NCHW


if __name__ == "__main__":
    key = jax.random.PRNGKey(0)
    k1, k2, k3, k4, k5, k6 = jax.random.split(key, 6)

    # Two tensors concatenated along C: (2, 4, 16, 16) + (2, 4, 16, 16)
    # -> in_chs = 8 for the BatchNorm2d.
    N, C1, C2, H, W = 2, 4, 4, 16, 16
    in_chs = C1 + C2
    xa = jax.random.normal(k1, (N, C1, H, W), dtype=jnp.float32)
    xb = jax.random.normal(k2, (N, C2, H, W), dtype=jnp.float32)

    # Deterministic synthetic BN parameters / running stats.
    gamma = 1.0 + 0.1 * jax.random.normal(k3, (in_chs,), dtype=jnp.float32)
    beta = 0.1 * jax.random.normal(k4, (in_chs,), dtype=jnp.float32)
    running_mean = 0.05 * jax.random.normal(k5, (in_chs,), dtype=jnp.float32)
    running_var = jnp.abs(1.0 + 0.1 * jax.random.normal(
        k6, (in_chs,), dtype=jnp.float32))

    out = cat_bn_act((xa, xb), gamma, beta, running_mean, running_var,
                     eps=1e-3)
    out = jax.block_until_ready(out)

    # Pure-JAX reference (inference-mode BatchNorm2d + ReLU, eps=1e-3).
    x_cat = jnp.concatenate((xa, xb), axis=1)
    sc = (gamma / jnp.sqrt(running_var + 1e-3)).reshape(1, in_chs, 1, 1)
    bs = (beta - running_mean * gamma / jnp.sqrt(running_var + 1e-3)
          ).reshape(1, in_chs, 1, 1)
    ref = jnp.maximum(x_cat * sc + bs, 0.0)

    assert out.shape == (N, in_chs, H, W)
    assert jnp.allclose(out, ref, atol=1e-5, rtol=1e-5)
    print("KERNEL_OK")
</pallas_src>

<mosaic_0001>
module attributes {stable_mosaic.version = 11 : i64} {
  func.func @kernel(%arg0: i32, %arg1: i32, %arg2: memref<1x4x256xf32, #tpu.memory_space<vmem>>, %arg3: memref<1x4x256xf32, #tpu.memory_space<vmem>>, %arg4: memref<8x2xf32, #tpu.memory_space<vmem>>, %arg5: memref<1x8x256xf32, #tpu.memory_space<vmem>>) attributes {dimension_semantics = [#tpu.dimension_semantics<parallel>, #tpu.dimension_semantics<parallel>], iteration_bounds = array<i64: 2, 1>, scalar_prefetch = 0 : i64, scratch_operands = 0 : i64, tpu.core_type = #tpu.core_type<tc>, window_params = [{transform_indices = @transform_0, window_bounds = array<i64: 1, 4, 256>}, {transform_indices = @transform_1, window_bounds = array<i64: 1, 4, 256>}, {pipeline_mode = #tpu.pipeline_mode<synchronous>, transform_indices = @transform_2, window_bounds = array<i64: 8, 2>}, {transform_indices = @transform_3, window_bounds = array<i64: 1, 8, 256>}]} {
    %c0 = arith.constant 0 : index
    %c0_0 = arith.constant 0 : index
    %0 = vector.load %arg4[%c0, %c0_0] : memref<8x2xf32, #tpu.memory_space<vmem>>, vector<4x1xf32>
    %c0_1 = arith.constant 0 : index
    %c1 = arith.constant 1 : index
    %1 = vector.load %arg4[%c0_1, %c1] : memref<8x2xf32, #tpu.memory_space<vmem>>, vector<4x1xf32>
    %c0_2 = arith.constant 0 : index
    %c0_3 = arith.constant 0 : index
    %c0_4 = arith.constant 0 : index
    %2 = vector.load %arg2[%c0_2, %c0_3, %c0_4] : memref<1x4x256xf32, #tpu.memory_space<vmem>>, vector<1x4x256xf32>
    %3 = vector.shape_cast %2 : vector<1x4x256xf32> to vector<4x256xf32>
    %4 = vector.broadcast %0 : vector<4x1xf32> to vector<4x256xf32>
    %5 = arith.mulf %3, %4 : vector<4x256xf32>
    %6 = vector.broadcast %1 : vector<4x1xf32> to vector<4x256xf32>
    %7 = arith.addf %5, %6 : vector<4x256xf32>
    %cst = arith.constant 0.000000e+00 : f32
    %8 = vector.broadcast %cst : f32 to vector<4x256xf32>
    %9 = arith.maximumf %7, %8 : vector<4x256xf32>
    %c0_5 = arith.constant 0 : index
    %c0_6 = arith.constant 0 : index
    %c0_7 = arith.constant 0 : index
    %10 = vector.load %arg5[%c0_5, %c0_6, %c0_7] : memref<1x8x256xf32, #tpu.memory_space<vmem>>, vector<1x4x256xf32>
    %11 = vector.shape_cast %10 : vector<1x4x256xf32> to vector<4x256xf32>
    %12 = vector.shape_cast %9 : vector<4x256xf32> to vector<1x4x256xf32>
    tpu.vector_store %arg5[%c0_5, %c0_6, %c0_7], %12 {strides = array<i32>} : memref<1x8x256xf32, #tpu.memory_space<vmem>>, vector<1x4x256xf32>,
    %c4 = arith.constant 4 : index
    %c0_8 = arith.constant 0 : index
    %13 = vector.load %arg4[%c4, %c0_8] : memref<8x2xf32, #tpu.memory_space<vmem>>, vector<4x1xf32>
    %c4_9 = arith.constant 4 : index
    %c1_10 = arith.constant 1 : index
    %14 = vector.load %arg4[%c4_9, %c1_10] : memref<8x2xf32, #tpu.memory_space<vmem>>, vector<4x1xf32>
    %c0_11 = arith.constant 0 : index
    %c0_12 = arith.constant 0 : index
    %c0_13 = arith.constant 0 : index
    %15 = vector.load %arg3[%c0_11, %c0_12, %c0_13] : memref<1x4x256xf32, #tpu.memory_space<vmem>>, vector<1x4x256xf32>
    %16 = vector.shape_cast %15 : vector<1x4x256xf32> to vector<4x256xf32>
    %17 = vector.broadcast %13 : vector<4x1xf32> to vector<4x256xf32>
    %18 = arith.mulf %16, %17 : vector<4x256xf32>
    %19 = vector.broadcast %14 : vector<4x1xf32> to vector<4x256xf32>
    %20 = arith.addf %18, %19 : vector<4x256xf32>
    %cst_14 = arith.constant 0.000000e+00 : f32
    %21 = vector.broadcast %cst_14 : f32 to vector<4x256xf32>
    %22 = arith.maximumf %20, %21 : vector<4x256xf32>
    %c0_15 = arith.constant 0 : index
    %c4_16 = arith.constant 4 : index
    %c0_17 = arith.constant 0 : index
    %23 = vector.load %arg5[%c0_15, %c4_16, %c0_17] : memref<1x8x256xf32, #tpu.memory_space<vmem>>, vector<1x4x256xf32>
    %24 = vector.shape_cast %23 : vector<1x4x256xf32> to vector<4x256xf32>
    %25 = vector.shape_cast %22 : vector<4x256xf32> to vector<1x4x256xf32>
    tpu.vector_store %arg5[%c0_15, %c4_16, %c0_17], %25 {strides = array<i32>} : memref<1x8x256xf32, #tpu.memory_space<vmem>>, vector<1x4x256xf32>,
    return
  }
  func.func @transform_0(%arg0: i32, %arg1: i32) -> (i32, i32, i32) {
    %c0_i32 = arith.constant 0 : i32
    %c0_i32_0 = arith.constant 0 : i32
    return %arg0, %c0_i32, %arg1 : i32, i32, i32
  }
  func.func @transform_1(%arg0: i32, %arg1: i32) -> (i32, i32, i32) {
    %c0_i32 = arith.constant 0 : i32
    %c0_i32_0 = arith.constant 0 : i32
    return %arg0, %c0_i32, %arg1 : i32, i32, i32
  }
  func.func @transform_2(%arg0: i32, %arg1: i32) -> (i32, i32) {
    %c0_i32 = arith.constant 0 : i32
    %c0_i32_0 = arith.constant 0 : i32
    %c0_i32_1 = arith.constant 0 : i32
    return %c0_i32, %c0_i32_0 : i32, i32
  }
  func.func @transform_3(%arg0: i32, %arg1: i32) -> (i32, i32, i32) {
    %c0_i32 = arith.constant 0 : i32
    %c0_i32_0 = arith.constant 0 : i32
    return %arg0, %c0_i32, %arg1 : i32, i32, i32
  }
}

</mosaic_0001>

<bundles_post_ra>
// kernel: tpu_custom_call.1
= control target key start
LH: loop header
LB: loop body
LE: loop exit
PB: predicated region body
PF: predicated region fallthrough
CT: control target
= control target key end

     0   :  { %8 = vsyncpa [#allocation3], 0  ;;  %s874_s0 = inlined_call_operand.hbm [shape: f32[2,4,256], index: 0, kind: input, shape index: {}]   ;;  %s875_s1 = inlined_call_operand.hbm [shape: f32[2,4,256], index: 1, kind: input, shape index: {}]   ;;  %s876_s2 = inlined_call_operand.vmem [shape: f32[8,2], index: 2, kind: input, shape index: {}]   ;;  %s877_s3 = inlined_call_operand.hbm [shape: f32[2,8,256], index: 3, kind: output, shape index: {}]  }
   0x1   :  { %10 = vsyncpa [#allocation3 + $0x1], 0 }
   0x2   :  { %11 = vsyncpa [#allocation6], 0 }
   0x3   :  { %13 = vsyncpa [#allocation6 + $0x1], 0 }
   0x4   :  { %14 = vsyncpa [#allocation4], 0 }
   0x5   :  { %16 = vsyncpa [#allocation4 + $0x1], 0  ;;  %s706_s12 = smov 0   ;;  %s708_s13 = smov 0  }
   0x6   :  { %s710_s14 = smov 0   ;;  %s712_s15 = smov 0  }
   0x7   :  { %s714_s16 = smov 0   ;;  %s716_s17 = smov 0  }
   0x8 LB: > { %s443_s18 = sadd.s32 4294967295, %s678_s17   ;;  %s444_s19 = sadd.s32 4294967294, %s678_s17   ;;  %s678_s17 = sphi %s716_s17, %s22_s17   ;;  %s674_s16 = sphi %s714_s16, %s889_s16   ;;  %s670_s15 = sphi %s712_s15, %s888_s15   ;;  %s666_s14 = sphi %s710_s14, %s887_s14   ;;  %s662_s13 = sphi %s708_s13, %s886_s13   ;;  %s658_s12 = sphi %s706_s12, %s885_s12  }
   0x9   : > { %s34_s20 = sadd.s32 1, %s674_s16  ;;  %s43_s21 = sadd.s32 1, %s666_s14 }
   0xa   : > { %p36_p0 = scmp.ge.s32.totalorder %s34_s20, 2  ;;  %p50_p1 = scmp.ne.s32.totalorder %s666_s14, %s662_s13 }
   0xb   : > { %p51_p2 = scmp.eq.s32.totalorder %s678_s17, 0  ;;  %p56_p3 = scmp.ne.s32.totalorder %s662_s13, %s658_s12 }
   0xc   : > { %s891_s20 = smov (%p36_p0, %s34_s20), 0  ;;  %p57_p5 = scmp.eq.s32.totalorder %s443_s18, 0 }
   0xd   : > { %p747_p4 = por %p51_p2, %p50_p1  ;;  %s38_s23 = ssub.s32 %s674_s16, %s891_s20 }
   0xe   : > { %p131_p6 = scmp.eq.s32.totalorder %s443_s18, 1  ;;  %p41_p7 = scmp.eq.s32.totalorder %s38_s23, 0 }
   0xf   : > { %p753_p8 = por %p57_p5, %p56_p3  ;;  %p137_p10 = scmp.eq.s32.totalorder %s444_s19, 1 }
  0x10   : > { %p757_p9 = por %p131_p6, %p50_p1  ;;  %p482_p13 = scmp.lt.s32.totalorder %s678_s17, 2 }
  0x11   : > { %s762_s26 = scalar_select %p41_p7, %s666_s14, %s43_s21  }
  0x12   : > { %p764_p11 = por %p137_p10, %p56_p3  ;;  %s771_s28 = sand.u32 1, %s666_s14  }
  0x13   : > { %s447_s29 = sshll.u32 %s771_s28, 3  ;;  %s462_s30 = sshll.u32 %s674_s16, 7 }
  0x14   : > { %s172_s6 = scalar_lea.hbm %s874_s0, %s462_s30  ;;  %s164_s7 = scalar_lea.vmem [#allocation2], %s447_s29 }
  0x15   : > { %s174_s8 = sshll.u32 %s164_s7, 4  ;;  %p780_p0 = pnand %p482_p13, %p747_p4  ;;  %s175_s8 = int_to_ptr.vmem [resolvable:$true] %s174_s8 }
  0x16   : > { %p453_p1 = scmp.ge.s32.totalorder %s678_s17, 1  ;;  %p200_p2 = scmp.lt.s32.totalorder %s678_s17, 3 }
  0x17   : > { %s161_s10 = scalar_lea.sflag [#allocation3], %s771_s28  ;;  %p540_p3 = pneg %p780_p0 }
  0x18   : > { %s551_s11 = scalar_lea.vmem %s175_s8, 128  ;;  %s680_s18 = smov [#allocation2]  }
  0x19   : > { %p552_p5 = scmp.ne.s32.totalorder %s175_s8, %s551_s11  ;;  %s556_s19 = sshll.u32 %s680_s18, 4  ;;  %s557_s19 = int_to_ptr.vmem [resolvable:$false] %s556_s19 }
  0x1a   : > { %s558_s21 = scalar_lea.vmem %s557_s19, 256  ;;  %p559_p4 = scmp.lt.s32.totalorder %s175_s8, %s557_s19 }
  0x1b   : > { %p554_p6 = pnand %p552_p5, %p540_p3  ;;  %p560_p10 = scmp.lt.s32.totalorder %s558_s21, %s551_s11 }
  0x1d   : > { %p555_p7 = pneg %p554_p6  ;;  %p561_p13 = por %p560_p10, %p559_p4 }
  0x1f   : > { %p562_p12 = pnand %p561_p13, %p555_p7 }
  0x21   : > { %565 = shalt.err (!%p562_p12)
}
  0x22   : > { %474 = dma.hbm_to_vmem [thread:$0]  (!%p780_p0), %s172_s6, 128, %s175_s8, %s161_s10  }
  0x23   : > { %p798_p5 = pnand %p453_p1, %p200_p2  ;;  %s193_s5 = scalar_lea.hbm %s875_s1, %s462_s30 }
  0x24   : > { %s185_s7 = scalar_lea.vmem [#allocation5], %s447_s29  ;;  %s182_s18 = scalar_lea.sflag [#allocation6], %s771_s28 }
  0x25   : > { %s195_s11 = sshll.u32 %s185_s7, 4  ;;  %s681_s6 = smov [#allocation5]   ;;  %s196_s11 = int_to_ptr.vmem [resolvable:$true] %s195_s11 }
  0x26   : > { %s579_s19 = scalar_lea.vmem %s196_s11, 128  ;;  %s584_s8 = sshll.u32 %s681_s6, 4  ;;  %s585_s8 = int_to_ptr.vmem [resolvable:$false] %s584_s8 }
  0x27   : > { %p580_p12 = scmp.ne.s32.totalorder %s196_s11, %s579_s19  ;;  %s586_s10 = scalar_lea.vmem %s585_s8, 256 }
  0x28   : > { %p587_p1 = scmp.lt.s32.totalorder %s196_s11, %s585_s8  ;;  %p588_p2 = scmp.lt.s32.totalorder %s586_s10, %s579_s19 }
  0x29   : > { %p582_p6 = pnand %p580_p12, %p540_p3 }
  0x2a   : > { %p589_p4 = por %p588_p2, %p587_p1 }
  0x2b   : > { %p583_p7 = pneg %p582_p6 }
  0x2d   : > { %p590_p10 = pnand %p589_p4, %p583_p7 }
  0x2f   : > { %593 = shalt.err (!%p590_p10)
}
  0x30   : > { %477 = dma.hbm_to_vmem [thread:$0]  (!%p780_p0), %s193_s5, 128, %s196_s11, %s182_s18  }
  0x31   : > { %204 = sbr.rel (%p798_p5) target bundleno = 210 (0xd2), region = 32  ;;  %s814_s28 = sand.u32 (!%p798_p5), 1, %s662_s13  }
  0x32   : > { %s454_s29 = sshll.u32 (!%p798_p5), %s814_s28, 3  ;;  %s207_s30 = scalar_lea.sflag (!%p798_p5), [#allocation3], %s814_s28 }
  0x33   : > { %s210_s21 = scalar_lea.vmem (!%p798_p5), [#allocation2], %s454_s29 }
  0x36   : > { %645 = dma.done.wait (%p753_p8), %s207_s30, 128  }
  0x37   : > { %647 = vsyncadd (%p753_p8), %s207_s30, 4294967168  ;;  %s216_s9 = scalar_lea.sflag [#allocation6], %s814_s28  ;;  %s219_s23 = scalar_lea.vmem [#allocation5], %s454_s29 }
  0x38   : > { %649 = dma.done.wait (%p753_p8), %s216_s9, 128  }
  0x39   : > { %651 = vsyncadd (%p753_p8), %s216_s9, 4294967168  ;;  %v682_v0 = vmov 1   ;;  %v683_v1 = vmov 0   ;;  %v250_v2 = vld [vmem:[%s876_s2] sm:$0xf]  ;;  %v259_v6 = vlaneseq  ;;  %s456_s24 = sshll.u32 %s814_s28, 4 }
  0x3a   : > { %536 = vset.pattern.permute.xlu1 %v682_v0  ;;  %535 = vset.pattern.permute.xlu0 %v683_v1  ;;  %v283_v3 = vld [vmem:[%s876_s2 + $0x4] sm:$0xf]  ;;  %v684_v4 = vmov 839922192   ;;  %v284_v17 = vld [vmem:[%s219_s23] sm:$0xff]  ;;  %s246_s11 = scalar_lea.vmem [#allocation7], %s456_s24 }
  0x3b   : > { %266 = vperm.xlu1 %536, %v250_v2   ;;  %254 = vperm.xlu0 %535, %v250_v2   ;;  %v257_v5 = vunpack.c.l.s4 %v684_v4  ;;  %v260_v8 = vshrl.u32 %v259_v6, 7  ;;  %v251_v11 = vld [vmem:[%s210_s21] sm:$0xff]  ;;  %s464_s18 = sshll.u32 %s670_s15, 8  ;;  %s333_s19 = sshll.u32 %s246_s11, 4  ;;  %s334_s19 = int_to_ptr.vmem [resolvable:$true] %s333_s19 }
  0x3c   : > { %s331_s10 = scalar_lea.hbm %s877_s3, %s464_s18  ;;  %s317_s29 = scalar_lea.sflag [#allocation4], %s814_s28 }
  0x3d   : > { %v258_v7 = vunpack.c.0.s8 %v257_v5  ;;  %s594_s30 = scalar_lea.vmem %s334_s19, 256  ;;  %s685_s21 = smov [#allocation7]  }
  0x3e   : > { %p595_p8 = scmp.ne.s32.totalorder %s334_s19, %s594_s30  ;;  %s598_s9 = sshll.u32 %s685_s21, 4  ;;  %s599_s9 = int_to_ptr.vmem [resolvable:$false] %s598_s9 }
  0x3f   : > { %299 = vperm.xlu1 %536, %v283_v3   ;;  %287 = vperm.xlu0 %535, %v283_v3   ;;  %v261_v9 = vsub.s32 %v258_v7, %v260_v8  ;;  %s600_s15 = scalar_lea.vmem %s599_s9, 512  ;;  %p601_p13 = scmp.lt.s32.totalorder %s334_s19, %s599_s9 }
  0x40   : > { %p596_p0 = pnand %p595_p8, %p757_p9  ;;  %p602_p5 = scmp.lt.s32.totalorder %s600_s15, %s594_s30 }
  0x42   : > { %p597_p3 = pneg %p596_p0  ;;  %p603_p12 = por %p602_p5, %p601_p13 }
  0x43   : > { %537 = vset.pattern.permute.xlu0 %v682_v0 }
  0x44   : > { %p604_p6 = pnand %p603_p12, %p597_p3 }
  0xb6   : > { %v267_v10 = vpop.permute.xlu1 %266  ;;  %v255_v12 = vpop.permute.xlu0 %254 }
  0xb7   : > { %v274_v13 = vrot.slane %v267_v10, %v261_v9  ;;  %v262_v14 = vrot.slane %v255_v12, %v261_v9 }
  0xb9   : > { %v264_v15 = vmul.f32 %v262_v14, %v251_v11 }
  0xba   : > { %v300_v16 = vpop.permute.xlu1 %299  ;;  %v288_v18 = vpop.permute.xlu0 %287 }
  0xbb   : > { %v276_v19 = vadd.f32 %v274_v13, %v264_v15  ;;  %v295_v20 = vrot.slane %v288_v18, %v261_v9  ;;  %v307_v22 = vrot.slane %v300_v16, %v261_v9 }
  0xbd   : > { %v277_v21 = vmax.f32 %v276_v19, 0.0  ;;  %v297_v23 = vmul.f32 %v295_v20, %v284_v17 }
  0xbf   : > { %v279_v24 = vcombine.high %v277_v21, %v277_v21  ;;  %281 = vst [vmem:[%s246_s11] sm:$0xf] %v277_v21  ;;  %v309_v25 = vadd.f32 %v307_v22, %v297_v23 }
  0xc1   : > { %282 = vst [vmem:[%s246_s11 + $0x8] sm:$0xf] %v279_v24  ;;  %v310_v26 = vmax.f32 %v309_v25, 0.0 }
  0xc3   : > { %v312_v27 = vcombine.low %v310_v26, %v310_v26  ;;  %315 = vst [vmem:[%s246_s11 + $0x8] sm:$0xf0] %v310_v26 }
  0xc5   : > { %314 = vst [vmem:[%s246_s11] sm:$0xf0] %v312_v27 }
  0xc6   : > { %607 = shalt.err (!%p604_p6)
}
  0xc7   : > { %s608_s23 = scalar_lea.hbm %s331_s10, 256  ;;  %s612_s4 = scalar_lea.hbm %s877_s3, 512 }
  0xc8   : > { %p609_p7 = scmp.ne.s32.totalorder %s331_s10, %s608_s23  ;;  %p613_p4 = scmp.lt.s32.totalorder %s331_s10, %s877_s3 }
  0xc9   : > { %p614_p10 = scmp.lt.s32.totalorder %s612_s4, %s608_s23 }
  0xca   : > { %p610_p1 = pnand %p609_p7, %p757_p9 }
  0xcb   : > { %p615_p8 = por %p614_p10, %p613_p4 }
  0xcc   : > { %p611_p2 = pneg %p610_p1 }
  0xce   : > { %p616_p0 = pnand %p615_p8, %p611_p2 }
  0xd0   : > { %619 = shalt.err (!%p616_p0)
}
  0xd1   : > { %469 = dma.vmem_to_hbm [thread:$0]  (%p757_p9), %s334_s19, 256, %s331_s10, %s317_s29  }
  0xd2 PF: > { %s345_s24 = sand.u32 1, %s658_s12   ;;  %p884_p3 = scmp.ge.s32.totalorder %s678_s17, 2 }
  0xd3   : > { %s346_s11 = scalar_lea.sflag [#allocation4], %s345_s24 }
  0xd4   : > { %p479_p13 = pnand %p884_p3, %p764_p11 }
  0xd6   : > { %p480_p5 = pneg %p479_p13 }
  0xd8   : > { %653 = dma.done.wait (%p480_p5), %s346_s11, 256  }
  0xd9   : > { %655 = vsyncadd (%p480_p5), %s346_s11, 4294967040  ;;  %s22_s17 = sadd.s32 1, %s678_s17   ;;  %s885_s12 = smov %s662_s13 }
  0xda   : > { %p19_p12 = scmp.ge.s32.totalorder %s22_s17, 4   ;;  %s886_s13 = smov %s666_s14 }
  0xdb   : > { %s887_s14 = smov %s762_s26  ;;  %s888_s15 = smov %s674_s16 }
  0xdc   : > { %s889_s16 = smov %s891_s20  ;;  %21 = sbr.rel (!%p19_p12) target bundleno = 8 (0x8), region = 90 }
  0xe1   :  { %351 = vsyncpa [#allocation3], 1 }
  0xe2   :  { %353 = vsyncpa [#allocation3 + $0x1], 1 }
  0xe3   :  { %354 = vsyncpa [#allocation6], 1 }
  0xe4   :  { %356 = vsyncpa [#allocation6 + $0x1], 1 }
  0xe5   :  { %357 = vsyncpa [#allocation4], 1 }
  0xe6   :  { %359 = vsyncpa [#allocation4 + $0x1], 1 }

</bundles_post_ra>
